<compile_context>
chip_gen: v7x
topology: tpu7x:2x2x1
jax: 0.10.0
libtpu: 0.0.40
codegen_flags: <defaults>
</compile_context>

<pallas_src>
import functools

import jax
import jax.numpy as jnp
from jax.experimental import pallas as pl
from jax.experimental.pallas import tpu as pltpu


_LANE = 128
_SUBLANE = 8
_SMALL_C = 8          # below this channel count, use the VPU (pixel-on-sublane) path
_MAX_TILE_LANES = 512 * _LANE   # 64K pixels per step: already deep in the >85%-roofline regime


def _cdiv(a, b):
    return (a + b - 1) // b


def _round_up(x, m):
    return _cdiv(x, m) * m


def _vmem_budget():
    """Return (vmem_limit_bytes to request, physical VMEM capacity)."""
    try:
        cap = int(pltpu.get_tpu_info().vmem_capacity_bytes)
    except Exception:
        cap = 64 * 1024 * 1024   # conservative: v7x per-TC VMEM (v5e/v6e have 128 MiB)
    # ~75% of physical, capped at 100 MiB: 48 MiB on v7x, 96 MiB on v5e/v6e.
    limit = min(cap * 3 // 4, 100 * 1024 * 1024)
    return limit, cap


def _invariant_spec(block_shape, index_map):
    """Grid-invariant operand: single-buffer it (no redundant second copy)."""
    try:
        return pl.BlockSpec(block_shape, index_map, pipeline_mode=pl.Buffered(1))
    except (TypeError, AttributeError):   # older JAX without pipeline_mode
        return pl.BlockSpec(block_shape, index_map)


# --------------------------------------------------------------------------
# Kernels
# --------------------------------------------------------------------------
def _prenorm_conv1x1_mxu_kernel(x_ref, wt_ref, wb_ref, o_ref, *, eps, inv_c):
    """General-C path: channels on sublanes, pixel tile on lanes, conv on MXU.

    x_ref : (1, C, T)     pixels of one image slab (T multiple of 128)
    wt_ref: (C_out, C_in) conv weight, transposed, gamma pre-folded
    wb_ref: (C_out, 1)    conv bias, beta pre-folded
    """
    x = x_ref[0].astype(jnp.float32)                        # (C, T)

    # Two-pass mean/variance over the channel (sublane) axis — matches
    # torch.var(unbiased=False) and avoids E[x^2]-mean^2 cancellation.
    mean = jnp.sum(x, axis=0, keepdims=True) * inv_c        # (1, T)
    xc = x - mean
    var = jnp.sum(xc * xc, axis=0, keepdims=True) * inv_c   # (1, T)
    normed = xc * jax.lax.rsqrt(var + eps)                  # (C, T), f32

    # 1x1 pointwise conv (+ folded gamma/beta): MXU matmul, lane-dense output.
    y = jnp.dot(wt_ref[...], normed.astype(wt_ref.dtype),
                preferred_element_type=jnp.float32)         # (C_out, T)
    y = y + wb_ref[...].astype(jnp.float32)
    o_ref[0] = y.astype(o_ref.dtype)


def _prenorm_conv1x1_vpu_kernel(x_ref, wt_ref, wb_ref, o_ref, *, eps, inv_c, c):
    """Small-C path: pixel tile on (sublane, lane); conv as broadcast FMAs.

    x_ref : (1, C, P, 128)  one (8k x 128)-shaped pixel plane per channel
    wt_ref: (C_out, C_in)   in SMEM (scalar reads)
    wb_ref: (C_out,)        in SMEM
    """
    x = x_ref[0].astype(jnp.float32)                        # (C, P, 128)

    # Channel reduction = C-1 elementwise adds of full vregs (pure VPU, no XLU).
    mean = jnp.sum(x, axis=0) * inv_c                       # (P, 128)
    xc = x - mean[None]
    var = jnp.sum(xc * xc, axis=0) * inv_c
    inv_std = jax.lax.rsqrt(var + eps)                      # (P, 128)
    normed = xc * inv_std[None]                             # (C, P, 128)

    # 1x1 conv as C*C scalar-broadcast FMAs (fully unrolled, C < 8).
    for co in range(c):
        y = jnp.full_like(mean, wb_ref[co])
        for ci in range(c):
            y = y + wt_ref[co, ci] * normed[ci]
        o_ref[0, co] = y.astype(o_ref.dtype)


# --------------------------------------------------------------------------
# Wrapper
# --------------------------------------------------------------------------
def prenorm_conv1x1(x_nchw, g, b, w, wb, *, eps=1e-5, force_bf16_matmul=False):
    """PreNorm(dim, fn=Conv2d(dim, dim, 1)) forward.

    x_nchw : (N, C, H, W)
    g, b   : (C,)   LayerNorm gamma / beta (PyTorch shape (1, C, 1, 1))
    w      : (C, C) 1x1 conv weight laid out as (C_in, C_out)
    wb     : (C,)   1x1 conv bias
    force_bf16_matmul: feed bf16 operands to the MXU even for f32 inputs
        (useful once C is large enough to approach compute-bound on v6e/v7x).
    """
    N, C, H, W = x_nchw.shape
    HW = H * W
    item = jnp.dtype(x_nchw.dtype).itemsize

    # ---- fold LayerNorm affine into the conv:
    #      y = (nr*g + b) @ W + wb = nr @ (diag(g) @ W) + (b @ W + wb)
    gf = jnp.reshape(g, (C,)).astype(jnp.float32)
    bf = jnp.reshape(b, (C,)).astype(jnp.float32)
    wf = w.astype(jnp.float32)                              # (C_in, C_out)
    wt = (gf[:, None] * wf).T                               # (C_out, C_in)
    wb_eff = jnp.reshape(wb, (C,)).astype(jnp.float32) + bf @ wf

    # ---- VMEM budget (per-generation aware) ----
    vmem_limit, _ = _vmem_budget()
    weight_bytes = C * C * 4 + C * 4
    tile_budget = max(vmem_limit - weight_bytes - 2 * 1024 * 1024, 1 * 1024 * 1024)

    # Free reshape: NCHW is contiguous, (N, C, H, W) -> (N, C, H*W).
    x3 = x_nchw.reshape(N, C, HW)

    compiler_params = pltpu.CompilerParams(
        dimension_semantics=("parallel", "parallel"),
        vmem_limit_bytes=int(vmem_limit))

    if C < _SMALL_C:
        # ---------------- small-C VPU path -----------------------------------
        p_total = _cdiv(HW, _LANE)                 # 128-lane rows per image
        min_tiles = 2 if (N == 1 and p_total >= 2 * _SUBLANE) else 1
        bytes_per_row = 2 * C * (2 * item) * _LANE  # in+out, double-buffered
        cap_rows = max(1, min(tile_budget // bytes_per_row, _MAX_TILE_LANES // _LANE))
        n_tiles = max(_cdiv(p_total, cap_rows), min_tiles)
        p_tile = p_total if n_tiles == 1 else _round_up(_cdiv(p_total, n_tiles), _SUBLANE)
        hw_pad = p_tile * n_tiles * _LANE

        if hw_pad != HW:   # only when H*W is not already a 128/tile multiple
            x3 = jnp.pad(x3, ((0, 0), (0, 0), (0, hw_pad - HW)))
        x4 = x3.reshape(N, C, hw_pad // _LANE, _LANE)

        kernel = functools.partial(_prenorm_conv1x1_vpu_kernel,
                                   eps=eps, inv_c=1.0 / C, c=C)
        cost = pl.CostEstimate(
            flops=int(N * C * hw_pad * (2 * C + 8)),
            transcendentals=int(N * hw_pad),
            bytes_accessed=int(2 * N * C * hw_pad * item + weight_bytes))

        out = pl.pallas_call(
            kernel,
            out_shape=jax.ShapeDtypeStruct((N, C, hw_pad // _LANE, _LANE), x_nchw.dtype),
            grid_spec=pltpu.PrefetchScalarGridSpec(
                num_scalar_prefetch=0,
                grid=(N, n_tiles),
                in_specs=[
                    pl.BlockSpec((1, C, p_tile, _LANE), lambda n, j: (n, 0, j, 0)),
                    pl.BlockSpec(memory_space=pltpu.MemorySpace.SMEM),   # wt scalars
                    pl.BlockSpec(memory_space=pltpu.MemorySpace.SMEM),   # wb scalars
                ],
                out_specs=pl.BlockSpec((1, C, p_tile, _LANE), lambda n, j: (n, 0, j, 0)),
            ),
            compiler_params=compiler_params,
            cost_estimate=cost,
        )(x4, wt, wb_eff)
        out3 = out.reshape(N, C, hw_pad)

    else:
        # ---------------- general-C MXU path ----------------------------------
        hw128 = _round_up(HW, _LANE)
        min_tiles = 2 if (N == 1 and hw128 >= 2 * _LANE) else 1
        bytes_per_lane = 2 * C * (2 * item)        # in+out, double-buffered
        cap_lanes = max(_LANE, min((tile_budget // bytes_per_lane) // _LANE * _LANE,
                                   _MAX_TILE_LANES))
        n_tiles = max(_cdiv(hw128, cap_lanes), min_tiles)
        tile = _round_up(_cdiv(hw128, n_tiles), _LANE)
        hw_pad = tile * n_tiles

        if hw_pad != HW:
            x3 = jnp.pad(x3, ((0, 0), (0, 0), (0, hw_pad - HW)))

        # Feed the MXU in the model dtype (bf16 stays bf16 for full rate).
        wt_op = wt.astype(jnp.bfloat16) if (x_nchw.dtype == jnp.bfloat16 or
                                            force_bf16_matmul) else wt
        wb_col = wb_eff.reshape(C, 1)

        kernel = functools.partial(_prenorm_conv1x1_mxu_kernel, eps=eps, inv_c=1.0 / C)
        cost = pl.CostEstimate(
            flops=int(N * C * hw_pad * (2 * C + 8)),
            transcendentals=int(N * hw_pad),
            bytes_accessed=int(2 * N * C * hw_pad * item + weight_bytes))

        out3 = pl.pallas_call(
            kernel,
            out_shape=jax.ShapeDtypeStruct((N, C, hw_pad), x_nchw.dtype),
            grid_spec=pltpu.PrefetchScalarGridSpec(
                num_scalar_prefetch=0,
                grid=(N, n_tiles),
                in_specs=[
                    pl.BlockSpec((1, C, tile), lambda n, j: (n, 0, j)),
                    _invariant_spec((C, C), lambda n, j: (0, 0)),   # single-buffered
                    _invariant_spec((C, 1), lambda n, j: (0, 0)),   # single-buffered
                ],
                out_specs=pl.BlockSpec((1, C, tile), lambda n, j: (n, 0, j)),
            ),
            compiler_params=compiler_params,
            cost_estimate=cost,
        )(x3, wt_op, wb_col)

    if hw_pad != HW:
        out3 = out3[:, :, :HW]
    return out3.reshape(N, C, H, W)


# --------------------------------------------------------------------------
# Pure-JAX reference (matches the PyTorch module semantics)
# --------------------------------------------------------------------------
def _reference(x_nchw, g, b, w, wb, eps=1e-5):
    xf = x_nchw.astype(jnp.float32)
    mean = jnp.mean(xf, axis=1, keepdims=True)
    var = jnp.mean((xf - mean) ** 2, axis=1, keepdims=True)
    normed = (xf - mean) / jnp.sqrt(var + eps)
    normed = normed * g.reshape(1, -1, 1, 1) + b.reshape(1, -1, 1, 1)
    y = jnp.einsum("nchw,cd->ndhw", normed, w.astype(jnp.float32))
    return (y + wb.reshape(1, -1, 1, 1)).astype(x_nchw.dtype)


if __name__ == "__main__":
    key = jax.random.PRNGKey(0)
    k_x, k_w, k_wb, k_g, k_b, k_x2, k_w2, k_wb2 = jax.random.split(key, 8)

    # ---- primary case (module demo shape): C=4 -> small-C VPU path --------
    N, C, H, W = 2, 4, 16, 16
    x = jax.random.normal(k_x, (N, C, H, W), dtype=jnp.float32) + 0.5  # non-zero mean
    g = jnp.ones((C,), dtype=jnp.float32)          # LayerNorm init: g = 1
    b = jnp.zeros((C,), dtype=jnp.float32)         #                 b = 0
    w = jax.random.normal(k_w, (C, C), dtype=jnp.float32) * 0.1       # (C_in, C_out)
    wb = jax.random.normal(k_wb, (C,), dtype=jnp.float32) * 0.1

    out = jax.block_until_ready(prenorm_conv1x1(x, g, b, w, wb))
    ref = _reference(x, g, b, w, wb)
    assert out.shape == (N, C, H, W)
    assert jnp.allclose(out, ref, atol=1e-4, rtol=1e-4), "small-C path mismatch"

    # ---- secondary case: MXU path + non-128-multiple H*W (padding path) ----
    C2, H2, W2 = 16, 14, 14          # H*W = 196 -> padded to 256 lanes
    x2 = jax.random.normal(k_x2, (N, C2, H2, W2), dtype=jnp.float32) - 0.25
    g2 = 1.0 + 0.1 * jax.random.normal(k_g, (C2,), dtype=jnp.float32)
    b2 = 0.1 * jax.random.normal(k_b, (C2,), dtype=jnp.float32)
    w2 = jax.random.normal(k_w2, (C2, C2), dtype=jnp.float32) * 0.1
    wb2 = jax.random.normal(k_wb2, (C2,), dtype=jnp.float32) * 0.1

    out2 = jax.block_until_ready(prenorm_conv1x1(x2, g2, b2, w2, wb2))
    ref2 = _reference(x2, g2, b2, w2, wb2)
    assert out2.shape == (N, C2, H2, W2)
    assert jnp.allclose(out2, ref2, atol=1e-4, rtol=1e-4), "MXU path mismatch"

    print("KERNEL_OK")
</pallas_src>

<mosaic_0001>
module attributes {stable_mosaic.version = 11 : i64} {
  func.func @_prenorm_conv1x1_vpu_kernel(%arg0: i32, %arg1: i32, %arg2: memref<1x4x2x128xf32, #tpu.memory_space<vmem>>, %arg3: memref<4x4xf32, #tpu.memory_space<smem>>, %arg4: memref<4xf32, #tpu.memory_space<smem>>, %arg5: memref<1x4x2x128xf32, #tpu.memory_space<vmem>>) attributes {dimension_semantics = [#tpu.dimension_semantics<parallel>, #tpu.dimension_semantics<parallel>], iteration_bounds = array<i64: 2, 1>, scalar_prefetch = 0 : i64, scratch_operands = 0 : i64, tpu.core_type = #tpu.core_type<tc>, window_params = [{transform_indices = @transform_0, window_bounds = array<i64: 1, 4, 2, 128>}, {transform_indices = @transform_1, window_bounds = array<i64: 4, 4>}, {transform_indices = @transform_2, window_bounds = array<i64: 4>}, {transform_indices = @transform_3, window_bounds = array<i64: 1, 4, 2, 128>}]} {
    %c0 = arith.constant 0 : index
    %c0_0 = arith.constant 0 : index
    %c0_1 = arith.constant 0 : index
    %c0_2 = arith.constant 0 : index
    %0 = vector.load %arg2[%c0, %c0_0, %c0_1, %c0_2] : memref<1x4x2x128xf32, #tpu.memory_space<vmem>>, vector<1x4x2x128xf32>
    %1 = vector.shape_cast %0 : vector<1x4x2x128xf32> to vector<4x2x128xf32>
    %cst = arith.constant dense<0.000000e+00> : vector<2x128xf32>
    %2 = vector.multi_reduction <add>, %1, %cst [0] : vector<4x2x128xf32> to vector<2x128xf32>
    %cst_3 = arith.constant 2.500000e-01 : f32
    %3 = vector.broadcast %cst_3 : f32 to vector<2x128xf32>
    %4 = arith.mulf %2, %3 : vector<2x128xf32>
    %5 = vector.shape_cast %4 : vector<2x128xf32> to vector<1x2x128xf32>
    %6 = vector.broadcast %5 : vector<1x2x128xf32> to vector<4x2x128xf32>
    %7 = arith.subf %1, %6 : vector<4x2x128xf32>
    %8 = arith.mulf %7, %7 : vector<4x2x128xf32>
    %cst_4 = arith.constant dense<0.000000e+00> : vector<2x128xf32>
    %9 = vector.multi_reduction <add>, %8, %cst_4 [0] : vector<4x2x128xf32> to vector<2x128xf32>
    %cst_5 = arith.constant 2.500000e-01 : f32
    %10 = vector.broadcast %cst_5 : f32 to vector<2x128xf32>
    %11 = arith.mulf %9, %10 : vector<2x128xf32>
    %cst_6 = arith.constant 9.99999974E-6 : f32
    %12 = vector.broadcast %cst_6 : f32 to vector<2x128xf32>
    %13 = arith.addf %11, %12 : vector<2x128xf32>
    %14 = math.rsqrt %13 : vector<2x128xf32>
    %15 = vector.shape_cast %14 : vector<2x128xf32> to vector<1x2x128xf32>
    %16 = vector.broadcast %15 : vector<1x2x128xf32> to vector<4x2x128xf32>
    %17 = arith.mulf %7, %16 : vector<4x2x128xf32>
    %c0_7 = arith.constant 0 : index
    %18 = memref.load %arg4[%c0_7] : memref<4xf32, #tpu.memory_space<smem>>
    %19 = vector.broadcast %18 : f32 to vector<2x128xf32>
    %c0_8 = arith.constant 0 : index
    %c0_9 = arith.constant 0 : index
    %20 = memref.load %arg3[%c0_8, %c0_9] : memref<4x4xf32, #tpu.memory_space<smem>>
    %21 = vector.extract_strided_slice %17 {offsets = [0, 0, 0], sizes = [1, 2, 128], strides = [1, 1, 1]} : vector<4x2x128xf32> to vector<1x2x128xf32>
    %22 = vector.shape_cast %21 : vector<1x2x128xf32> to vector<2x128xf32>
    %23 = vector.broadcast %20 : f32 to vector<2x128xf32>
    %24 = arith.mulf %23, %22 : vector<2x128xf32>
    %25 = arith.addf %19, %24 : vector<2x128xf32>
    %c0_10 = arith.constant 0 : index
    %c1 = arith.constant 1 : index
    %26 = memref.load %arg3[%c0_10, %c1] : memref<4x4xf32, #tpu.memory_space<smem>>
    %27 = vector.extract_strided_slice %17 {offsets = [1, 0, 0], sizes = [1, 2, 128], strides = [1, 1, 1]} : vector<4x2x128xf32> to vector<1x2x128xf32>
    %28 = vector.shape_cast %27 : vector<1x2x128xf32> to vector<2x128xf32>
    %29 = vector.broadcast %26 : f32 to vector<2x128xf32>
    %30 = arith.mulf %29, %28 : vector<2x128xf32>
    %31 = arith.addf %25, %30 : vector<2x128xf32>
    %c0_11 = arith.constant 0 : index
    %c2 = arith.constant 2 : index
    %32 = memref.load %arg3[%c0_11, %c2] : memref<4x4xf32, #tpu.memory_space<smem>>
    %33 = vector.extract_strided_slice %17 {offsets = [2, 0, 0], sizes = [1, 2, 128], strides = [1, 1, 1]} : vector<4x2x128xf32> to vector<1x2x128xf32>
    %34 = vector.shape_cast %33 : vector<1x2x128xf32> to vector<2x128xf32>
    %35 = vector.broadcast %32 : f32 to vector<2x128xf32>
    %36 = arith.mulf %35, %34 : vector<2x128xf32>
    %37 = arith.addf %31, %36 : vector<2x128xf32>
    %c0_12 = arith.constant 0 : index
    %c3 = arith.constant 3 : index
    %38 = memref.load %arg3[%c0_12, %c3] : memref<4x4xf32, #tpu.memory_space<smem>>
    %39 = vector.extract_strided_slice %17 {offsets = [3, 0, 0], sizes = [1, 2, 128], strides = [1, 1, 1]} : vector<4x2x128xf32> to vector<1x2x128xf32>
    %40 = vector.shape_cast %39 : vector<1x2x128xf32> to vector<2x128xf32>
    %41 = vector.broadcast %38 : f32 to vector<2x128xf32>
    %42 = arith.mulf %41, %40 : vector<2x128xf32>
    %43 = arith.addf %37, %42 : vector<2x128xf32>
    %c0_13 = arith.constant 0 : index
    %c0_14 = arith.constant 0 : index
    %c0_15 = arith.constant 0 : index
    %c0_16 = arith.constant 0 : index
    %44 = vector.load %arg5[%c0_13, %c0_14, %c0_15, %c0_16] : memref<1x4x2x128xf32, #tpu.memory_space<vmem>>, vector<1x1x2x128xf32>
    %45 = vector.shape_cast %44 : vector<1x1x2x128xf32> to vector<2x128xf32>
    %46 = vector.shape_cast %43 : vector<2x128xf32> to vector<1x1x2x128xf32>
    tpu.vector_store %arg5[%c0_13, %c0_14, %c0_15, %c0_16], %46 {strides = array<i32>} : memref<1x4x2x128xf32, #tpu.memory_space<vmem>>, vector<1x1x2x128xf32>,
    %c1_17 = arith.constant 1 : index
    %47 = memref.load %arg4[%c1_17] : memref<4xf32, #tpu.memory_space<smem>>
    %48 = vector.broadcast %47 : f32 to vector<2x128xf32>
    %c1_18 = arith.constant 1 : index
    %c0_19 = arith.constant 0 : index
    %49 = memref.load %arg3[%c1_18, %c0_19] : memref<4x4xf32, #tpu.memory_space<smem>>
    %50 = vector.extract_strided_slice %17 {offsets = [0, 0, 0], sizes = [1, 2, 128], strides = [1, 1, 1]} : vector<4x2x128xf32> to vector<1x2x128xf32>
    %51 = vector.shape_cast %50 : vector<1x2x128xf32> to vector<2x128xf32>
    %52 = vector.broadcast %49 : f32 to vector<2x128xf32>
    %53 = arith.mulf %52, %51 : vector<2x128xf32>
    %54 = arith.addf %48, %53 : vector<2x128xf32>
    %c1_20 = arith.constant 1 : index
    %c1_21 = arith.constant 1 : index
    %55 = memref.load %arg3[%c1_20, %c1_21] : memref<4x4xf32, #tpu.memory_space<smem>>
    %56 = vector.extract_strided_slice %17 {offsets = [1, 0, 0], sizes = [1, 2, 128], strides = [1, 1, 1]} : vector<4x2x128xf32> to vector<1x2x128xf32>
    %57 = vector.shape_cast %56 : vector<1x2x128xf32> to vector<2x128xf32>
    %58 = vector.broadcast %55 : f32 to vector<2x128xf32>
    %59 = arith.mulf %58, %57 : vector<2x128xf32>
    %60 = arith.addf %54, %59 : vector<2x128xf32>
    %c1_22 = arith.constant 1 : index
    %c2_23 = arith.constant 2 : index
    %61 = memref.load %arg3[%c1_22, %c2_23] : memref<4x4xf32, #tpu.memory_space<smem>>
    %62 = vector.extract_strided_slice %17 {offsets = [2, 0, 0], sizes = [1, 2, 128], strides = [1, 1, 1]} : vector<4x2x128xf32> to vector<1x2x128xf32>
    %63 = vector.shape_cast %62 : vector<1x2x128xf32> to vector<2x128xf32>
    %64 = vector.broadcast %61 : f32 to vector<2x128xf32>
    %65 = arith.mulf %64, %63 : vector<2x128xf32>
    %66 = arith.addf %60, %65 : vector<2x128xf32>
    %c1_24 = arith.constant 1 : index
    %c3_25 = arith.constant 3 : index
    %67 = memref.load %arg3[%c1_24, %c3_25] : memref<4x4xf32, #tpu.memory_space<smem>>
    %68 = vector.extract_strided_slice %17 {offsets = [3, 0, 0], sizes = [1, 2, 128], strides = [1, 1, 1]} : vector<4x2x128xf32> to vector<1x2x128xf32>
    %69 = vector.shape_cast %68 : vector<1x2x128xf32> to vector<2x128xf32>
    %70 = vector.broadcast %67 : f32 to vector<2x128xf32>
    %71 = arith.mulf %70, %69 : vector<2x128xf32>
    %72 = arith.addf %66, %71 : vector<2x128xf32>
    %c0_26 = arith.constant 0 : index
    %c1_27 = arith.constant 1 : index
    %c0_28 = arith.constant 0 : index
    %c0_29 = arith.constant 0 : index
    %73 = vector.load %arg5[%c0_26, %c1_27, %c0_28, %c0_29] : memref<1x4x2x128xf32, #tpu.memory_space<vmem>>, vector<1x1x2x128xf32>
    %74 = vector.shape_cast %73 : vector<1x1x2x128xf32> to vector<2x128xf32>
    %75 = vector.shape_cast %72 : vector<2x128xf32> to vector<1x1x2x128xf32>
    tpu.vector_store %arg5[%c0_26, %c1_27, %c0_28, %c0_29], %75 {strides = array<i32>} : memref<1x4x2x128xf32, #tpu.memory_space<vmem>>, vector<1x1x2x128xf32>,
    %c2_30 = arith.constant 2 : index
    %76 = memref.load %arg4[%c2_30] : memref<4xf32, #tpu.memory_space<smem>>
    %77 = vector.broadcast %76 : f32 to vector<2x128xf32>
    %c2_31 = arith.constant 2 : index
    %c0_32 = arith.constant 0 : index
    %78 = memref.load %arg3[%c2_31, %c0_32] : memref<4x4xf32, #tpu.memory_space<smem>>
    %79 = vector.extract_strided_slice %17 {offsets = [0, 0, 0], sizes = [1, 2, 128], strides = [1, 1, 1]} : vector<4x2x128xf32> to vector<1x2x128xf32>
    %80 = vector.shape_cast %79 : vector<1x2x128xf32> to vector<2x128xf32>
    %81 = vector.broadcast %78 : f32 to vector<2x128xf32>
    %82 = arith.mulf %81, %80 : vector<2x128xf32>
    %83 = arith.addf %77, %82 : vector<2x128xf32>
    %c2_33 = arith.constant 2 : index
    %c1_34 = arith.constant 1 : index
    %84 = memref.load %arg3[%c2_33, %c1_34] : memref<4x4xf32, #tpu.memory_space<smem>>
    %85 = vector.extract_strided_slice %17 {offsets = [1, 0, 0], sizes = [1, 2, 128], strides = [1, 1, 1]} : vector<4x2x128xf32> to vector<1x2x128xf32>
    %86 = vector.shape_cast %85 : vector<1x2x128xf32> to vector<2x128xf32>
    %87 = vector.broadcast %84 : f32 to vector<2x128xf32>
    %88 = arith.mulf %87, %86 : vector<2x128xf32>
    %89 = arith.addf %83, %88 : vector<2x128xf32>
    %c2_35 = arith.constant 2 : index
    %c2_36 = arith.constant 2 : index
    %90 = memref.load %arg3[%c2_35, %c2_36] : memref<4x4xf32, #tpu.memory_space<smem>>
    %91 = vector.extract_strided_slice %17 {offsets = [2, 0, 0], sizes = [1, 2, 128], strides = [1, 1, 1]} : vector<4x2x128xf32> to vector<1x2x128xf32>
    %92 = vector.shape_cast %91 : vector<1x2x128xf32> to vector<2x128xf32>
    %93 = vector.broadcast %90 : f32 to vector<2x128xf32>
    %94 = arith.mulf %93, %92 : vector<2x128xf32>
    %95 = arith.addf %89, %94 : vector<2x128xf32>
    %c2_37 = arith.constant 2 : index
    %c3_38 = arith.constant 3 : index
    %96 = memref.load %arg3[%c2_37, %c3_38] : memref<4x4xf32, #tpu.memory_space<smem>>
    %97 = vector.extract_strided_slice %17 {offsets = [3, 0, 0], sizes = [1, 2, 128], strides = [1, 1, 1]} : vector<4x2x128xf32> to vector<1x2x128xf32>
    %98 = vector.shape_cast %97 : vector<1x2x128xf32> to vector<2x128xf32>
    %99 = vector.broadcast %96 : f32 to vector<2x128xf32>
    %100 = arith.mulf %99, %98 : vector<2x128xf32>
    %101 = arith.addf %95, %100 : vector<2x128xf32>
    %c0_39 = arith.constant 0 : index
    %c2_40 = arith.constant 2 : index
    %c0_41 = arith.constant 0 : index
    %c0_42 = arith.constant 0 : index
    %102 = vector.load %arg5[%c0_39, %c2_40, %c0_41, %c0_42] : memref<1x4x2x128xf32, #tpu.memory_space<vmem>>, vector<1x1x2x128xf32>
    %103 = vector.shape_cast %102 : vector<1x1x2x128xf32> to vector<2x128xf32>
    %104 = vector.shape_cast %101 : vector<2x128xf32> to vector<1x1x2x128xf32>
    tpu.vector_store %arg5[%c0_39, %c2_40, %c0_41, %c0_42], %104 {strides = array<i32>} : memref<1x4x2x128xf32, #tpu.memory_space<vmem>>, vector<1x1x2x128xf32>,
    %c3_43 = arith.constant 3 : index
    %105 = memref.load %arg4[%c3_43] : memref<4xf32, #tpu.memory_space<smem>>
    %106 = vector.broadcast %105 : f32 to vector<2x128xf32>
    %c3_44 = arith.constant 3 : index
    %c0_45 = arith.constant 0 : index
    %107 = memref.load %arg3[%c3_44, %c0_45] : memref<4x4xf32, #tpu.memory_space<smem>>
    %108 = vector.extract_strided_slice %17 {offsets = [0, 0, 0], sizes = [1, 2, 128], strides = [1, 1, 1]} : vector<4x2x128xf32> to vector<1x2x128xf32>
    %109 = vector.shape_cast %108 : vector<1x2x128xf32> to vector<2x128xf32>
    %110 = vector.broadcast %107 : f32 to vector<2x128xf32>
    %111 = arith.mulf %110, %109 : vector<2x128xf32>
    %112 = arith.addf %106, %111 : vector<2x128xf32>
    %c3_46 = arith.constant 3 : index
    %c1_47 = arith.constant 1 : index
    %113 = memref.load %arg3[%c3_46, %c1_47] : memref<4x4xf32, #tpu.memory_space<smem>>
    %114 = vector.extract_strided_slice %17 {offsets = [1, 0, 0], sizes = [1, 2, 128], strides = [1, 1, 1]} : vector<4x2x128xf32> to vector<1x2x128xf32>
    %115 = vector.shape_cast %114 : vector<1x2x128xf32> to vector<2x128xf32>
    %116 = vector.broadcast %113 : f32 to vector<2x128xf32>
    %117 = arith.mulf %116, %115 : vector<2x128xf32>
    %118 = arith.addf %112, %117 : vector<2x128xf32>
    %c3_48 = arith.constant 3 : index
    %c2_49 = arith.constant 2 : index
    %119 = memref.load %arg3[%c3_48, %c2_49] : memref<4x4xf32, #tpu.memory_space<smem>>
    %120 = vector.extract_strided_slice %17 {offsets = [2, 0, 0], sizes = [1, 2, 128], strides = [1, 1, 1]} : vector<4x2x128xf32> to vector<1x2x128xf32>
    %121 = vector.shape_cast %120 : vector<1x2x128xf32> to vector<2x128xf32>
    %122 = vector.broadcast %119 : f32 to vector<2x128xf32>
    %123 = arith.mulf %122, %121 : vector<2x128xf32>
    %124 = arith.addf %118, %123 : vector<2x128xf32>
    %c3_50 = arith.constant 3 : index
    %c3_51 = arith.constant 3 : index
    %125 = memref.load %arg3[%c3_50, %c3_51] : memref<4x4xf32, #tpu.memory_space<smem>>
    %126 = vector.extract_strided_slice %17 {offsets = [3, 0, 0], sizes = [1, 2, 128], strides = [1, 1, 1]} : vector<4x2x128xf32> to vector<1x2x128xf32>
    %127 = vector.shape_cast %126 : vector<1x2x128xf32> to vector<2x128xf32>
    %128 = vector.broadcast %125 : f32 to vector<2x128xf32>
    %129 = arith.mulf %128, %127 : vector<2x128xf32>
    %130 = arith.addf %124, %129 : vector<2x128xf32>
    %c0_52 = arith.constant 0 : index
    %c3_53 = arith.constant 3 : index
    %c0_54 = arith.constant 0 : index
    %c0_55 = arith.constant 0 : index
    %131 = vector.load %arg5[%c0_52, %c3_53, %c0_54, %c0_55] : memref<1x4x2x128xf32, #tpu.memory_space<vmem>>, vector<1x1x2x128xf32>
    %132 = vector.shape_cast %131 : vector<1x1x2x128xf32> to vector<2x128xf32>
    %133 = vector.shape_cast %130 : vector<2x128xf32> to vector<1x1x2x128xf32>
    tpu.vector_store %arg5[%c0_52, %c3_53, %c0_54, %c0_55], %133 {strides = array<i32>} : memref<1x4x2x128xf32, #tpu.memory_space<vmem>>, vector<1x1x2x128xf32>,
    return
  }
  func.func @transform_0(%arg0: i32, %arg1: i32) -> (i32, i32, i32, i32) {
    %c0_i32 = arith.constant 0 : i32
    %c0_i32_0 = arith.constant 0 : i32
    %c0_i32_1 = arith.constant 0 : i32
    return %arg0, %c0_i32, %arg1, %c0_i32_0 : i32, i32, i32, i32
  }
  func.func @transform_1(%arg0: i32, %arg1: i32) -> (i32, i32) {
    %c0_i32 = arith.constant 0 : i32
    %c0_i32_0 = arith.constant 0 : i32
    %c0_i32_1 = arith.constant 0 : i32
    return %c0_i32, %c0_i32_0 : i32, i32
  }
  func.func @transform_2(%arg0: i32, %arg1: i32) -> i32 {
    %c0_i32 = arith.constant 0 : i32
    %c0_i32_0 = arith.constant 0 : i32
    return %c0_i32 : i32
  }
  func.func @transform_3(%arg0: i32, %arg1: i32) -> (i32, i32, i32, i32) {
    %c0_i32 = arith.constant 0 : i32
    %c0_i32_0 = arith.constant 0 : i32
    %c0_i32_1 = arith.constant 0 : i32
    return %arg0, %c0_i32, %arg1, %c0_i32_0 : i32, i32, i32, i32
  }
}

</mosaic_0001>

<bundles_post_ra>
// kernel: tpu_custom_call.1
= control target key start
LH: loop header
LB: loop body
LE: loop exit
PB: predicated region body
PF: predicated region fallthrough
CT: control target
= control target key end

     0   :  { %s1072_s0 = inlined_call_operand.hbm [shape: f32[2,4,2,128], index: 0, kind: input, shape index: {}]   ;;  %s1073_s1 = inlined_call_operand.hbm [shape: f32[4,4], index: 1, kind: input, shape index: {}]   ;;  %s1074_s2 = inlined_call_operand.vmem [shape: f32[4], index: 2, kind: input, shape index: {}]   ;;  %s1075_s3 = inlined_call_operand.hbm [shape: f32[2,4,2,128], index: 3, kind: output, shape index: {}]  }
   0x1   :  { %1082 = sst [smem:[#allocation15_spill]] %s1072_s0 }
   0x2   :  { %1083 = sst [smem:[#allocation16_spill]] %s1073_s1 }
   0x3   :  { %1084 = sst [smem:[#allocation17_spill]] %s1074_s2 }
   0x4   :  { %8 = vsyncpa [#allocation3], 0 }
   0x5   :  { %10 = vsyncpa [#allocation3 + $0x1], 0 }
   0x6   :  { %11 = vsyncpa [#allocation5], 0 }
   0x7   :  { %12 = vsyncpa [#allocation6], 0 }
   0x8   :  { %13 = vsyncpa [#allocation4], 0 }
   0x9   :  { %15 = vsyncpa [#allocation4 + $0x1], 0  ;;  %s778_s12 = smov 0   ;;  %s780_s13 = smov 0  }
   0xa   :  { %s782_s14 = smov 0   ;;  %s784_s15 = smov 0  }
   0xb   :  { %s786_s16 = smov 0   ;;  %s788_s17 = smov 0  }
   0xc LB: > { %s469_s18 = sadd.s32 4294967295, %s748_s17   ;;  %s470_s19 = sadd.s32 4294967294, %s748_s17   ;;  %s748_s17 = sphi %s788_s17, %s21_s17   ;;  %s744_s16 = sphi %s786_s16, %s1107_s16   ;;  %s740_s15 = sphi %s784_s15, %s1106_s15   ;;  %s736_s14 = sphi %s782_s14, %s1105_s14   ;;  %s732_s13 = sphi %s780_s13, %s1104_s13   ;;  %s728_s12 = sphi %s778_s12, %s1103_s12  }
   0xd   : > { %s42_s20 = sadd.s32 1, %s736_s14  ;;  %p49_p0 = scmp.ne.s32.totalorder %s736_s14, %s732_s13 }
   0xe   : > { %p50_p1 = scmp.eq.s32.totalorder %s748_s17, 0  ;;  %p55_p2 = scmp.ne.s32.totalorder %s732_s13, %s728_s12 }
   0xf   : > { %p816_p3 = scmp.eq.s32.totalorder %s469_s18, 0  ;;  %p123_p4 = scmp.eq.s32.totalorder %s469_s18, 1 }
  0x10   : > { %p51_p5 = por %p50_p1, %p49_p0  ;;  %p129_p6 = scmp.eq.s32.totalorder %s470_s19, 1 }
  0x11   : > { %s1085_s21 = scalar_select %p816_p3, 1, 0 }
  0x12   : > { %p822_p7 = por %p816_p3, %p55_p2  ;;  %p826_p8 = por %p123_p4, %p49_p0 }
  0x13   : > { %p830_p9 = por %p129_p6, %p55_p2  ;;  %p471_p10 = scmp.ge.s32.totalorder %s748_s17, 1 }
  0x14   : > { %s1086_s22 = scalar_select %p822_p7, 1, 0 }
  0x15   : > { %s1087_s23 = scalar_select %p826_p8, 1, 0 }
  0x16   : > { %s1088_s24 = scalar_select %p830_p9, 1, 0 }
  0x17   : > { %p136_p11 = scmp.lt.s32.totalorder %s748_s17, 3  ;;  %p540_p1 = scmp.lt.s32.totalorder %s748_s17, 2 }
  0x18   : > { %s1090_s2 = sld [smem:[#allocation17_spill]]  ;;  %s169_s4 = sand.u32 1, %s736_s14  }
  0x19   : > { %p837_p13 = pnand %p471_p10, %p136_p11  ;;  %p847_p4 = pnand %p540_p1, %p51_p5 }
  0x1a   : > { %s33_s5 = sadd.s32 1, %s744_s16  ;;  %s1093_s1 = sld [smem:[#allocation16_spill]] }
  0x1b   : > { %p523_p0 = pneg %p837_p13 }
  0x1d   : > { %p853_p2 = pnand %p523_p0, %p816_p3 }
  0x1e   : > { %s158_s28 = sshll.u32 %s1090_s2, 4  ;;  %s159_s28 = int_to_ptr.vmem [resolvable:$true] %s158_s28 }
  0x1f   : > { %p602_p6 = pneg %p853_p2 }
  0x20   : > { %s600_s8 = scalar_lea.hbm %s1093_s1, 64 }
  0x21   : > { %p601_p5 = scmp.ne.s32.totalorder %s1093_s1, %s600_s8  ;;  %p607_p1 = scmp.lt.u32.totalorder %s600_s8, %s1093_s1 }
  0x23   : > { %p603_p10 = pnand %p602_p6, %p601_p5 }
  0x25   : > { %p604_p11 = pneg %p603_p10 }
  0x27   : > { %p609_p0 = pnand %p607_p1, %p604_p11 }
  0x29   : > { %612 = shalt.err (!%p609_p0)
}
  0x2a   : > { %s750_s19 = smov [#allocation7]   ;;  %s613_s6 = scalar_lea.vmem %s159_s28, 16 }
  0x2b   : > { %526 = dma.hbm_to_smem (!%p853_p2), %s1093_s1, 64, %s750_s19, [#allocation5]  }
  0x2c   : > { %p614_p12 = scmp.ne.s32.totalorder %s159_s28, %s613_s6  ;;  %p621_p3 = scmp.lt.s32.totalorder %s159_s28, %s159_s28 }
  0x2d   : > { %p622_p5 = scmp.lt.s32.totalorder %s613_s6, %s613_s6 }
  0x2e   : > { %p616_p9 = pnand %p614_p12, %p602_p6 }
  0x2f   : > { %p623_p10 = por %p622_p5, %p621_p3 }
  0x30   : > { %p617_p8 = pneg %p616_p9 }
  0x32   : > { %p624_p7 = pnand %p623_p10, %p617_p8 }
  0x34   : > { %627 = shalt.err (!%p624_p7)
}
  0x35   : > { %s751_s7 = smov [#allocation8]   ;;  %p35_p11 = scmp.ge.s32.totalorder %s33_s5, 2 }
  0x36   : > { %529 = dma.vmem_to_smem (!%p853_p2), %s159_s28, 16, %s751_s7, [#allocation6]  }
  0x37   : > { %s475_s8 = sshll.u32 %s169_s4, 3  ;;  %s509_s9 = sshll.u32 %s744_s16, 7 }
  0x38   : > { %s1109_s5 = smov (%p35_p11, %s33_s5), 0  ;;  %s1095_s0 = sld [smem:[#allocation15_spill]] }
  0x39   : > { %1094 = sst [smem:[#allocation14_spill]] %s1109_s5  ;;  %s37_s18 = ssub.s32 %s744_s16, %s1109_s5 }
  0x3a   : > { %s173_s19 = scalar_lea.vmem [#allocation2], %s475_s8  ;;  %p40_p3 = scmp.eq.s32.totalorder %s37_s18, 0 }
  0x3b   : > { %s181_s28 = sshll.u32 %s173_s19, 4  ;;  %s898_s27 = scalar_lea.sflag [#allocation3], %s169_s4  ;;  %s889_s28 = int_to_ptr.vmem [resolvable:$true] %s181_s28 }
  0x3c   : > { %s894_s26 = scalar_select %p40_p3, %s736_s14, %s42_s20  }
  0x3d   : > { %p630_p8 = pneg %p847_p4 }
  0x3e   : > { %s885_s30 = scalar_lea.hbm %s1095_s0, %s509_s9  ;;  %s633_s9 = scalar_lea.hbm %s1095_s0, 256 }
  0x3f   : > { %s628_s6 = scalar_lea.hbm %s885_s30, 128  ;;  %p634_p2 = scmp.lt.u32.totalorder %s885_s30, %s1095_s0 }
  0x40   : > { %p629_p7 = scmp.ne.s32.totalorder %s885_s30, %s628_s6  ;;  %p635_p6 = scmp.lt.u32.totalorder %s633_s9, %s628_s6 }
  0x41   : > { %p637_p0 = scmp.lt.u32.totalorder %s628_s6, %s885_s30 }
  0x42   : > { %p631_p9 = pnand %p630_p8, %p629_p7  ;;  %p636_p1 = por %p635_p6, %p634_p2 }
  0x44   : > { %p632_p12 = pneg %p631_p9  ;;  %p638_p5 = por %p637_p0, %p636_p1 }
  0x46   : > { %p639_p10 = pnand %p638_p5, %p632_p12 }
  0x48   : > { %642 = shalt.err (!%p639_p10)
}
  0x49   : > { %s643_s20 = scalar_lea.vmem %s889_s28, 128  ;;  %s752_s4 = smov [#allocation2]  }
  0x4a   : > { %p644_p11 = scmp.ne.s32.totalorder %s889_s28, %s643_s20  ;;  %s648_s18 = sshll.u32 %s752_s4, 4  ;;  %s649_s18 = int_to_ptr.vmem [resolvable:$false] %s648_s18 }
  0x4b   : > { %s650_s19 = scalar_lea.vmem %s649_s18, 256  ;;  %p651_p9 = scmp.lt.s32.totalorder %s889_s28, %s649_s18 }
  0x4c   : > { %p646_p3 = pnand %p644_p11, %p630_p8  ;;  %p652_p2 = scmp.lt.s32.totalorder %s650_s19, %s643_s20 }
  0x4e   : > { %p647_p7 = pneg %p646_p3  ;;  %p653_p6 = por %p652_p2, %p651_p9 }
  0x50   : > { %p654_p1 = pnand %p653_p6, %p647_p7 }
  0x52   : > { %657 = shalt.err (!%p654_p1)
}
  0x53   : > { %s753_s6 = smov 32   ;;  %s754_s7 = smov 2  }
  0x54   : > { %533 = dma.hbm_to_vmem [thread:$0]  (!%p847_p4), %s885_s30, 128, %s889_s28, %s898_s27, %s753_s6, %s753_s6, %s754_s7  }
  0x55   : > { %193 = sbr.rel (%p837_p13) target bundleno = 165 (0xa5), region = 32  ;;  %s929_s8 = sand.u32 (!%p837_p13), 1, %s732_s13  }
  0x56   : > { %s1080_s9 = sshll.u32 (!%p837_p13), %s929_s8, 3  ;;  %s196_s10 = scalar_lea.sflag (!%p837_p13), [#allocation3], %s929_s8 }
  0x57   : > { %s199_s11 = scalar_lea.vmem (!%p837_p13), [#allocation2], %s1080_s9  ;;  %p1096_p8 = scmp.ne.s32.totalorder (!%p837_p13), %s1086_s22, 0 }
  0x5c   : > { %711 = dma.done.wait (%p1096_p8), %s196_s10, 128  }
  0x5d   : > { %713 = vsyncadd (%p1096_p8), %s196_s10, 4294967168  ;;  %p1097_p4 = scmp.ne.s32.totalorder %s1085_s21, 0 }
  0x5f   : > { %715 = dma.done.wait (%p1097_p4), [#allocation5], 64  }
  0x60   : > { %717 = vsyncadd (%p1097_p4), [#allocation5], 4294967232 }
  0x61   : > { %719 = dma.done.wait (%p1097_p4), [#allocation6], 16  }
  0x62   : > { %721 = vsyncadd (%p1097_p4), [#allocation6], 4294967280 }
  0x63   : > { %212 = sfence }
  0x64   : > { %v231_v0 = vld [vmem:[%s199_s11] sm:$0x3]  ;;  %v232_v1 = vld [vmem:[%s199_s11 + $0x2] sm:$0x3]  ;;  %vm235_vm0 = vcmask 1041408   ;;  %s955_s21 = sld [smem:[#allocation8]] }
  0x65   : > { %v233_v2 = vld [vmem:[%s199_s11 + $0x4] sm:$0x3]  ;;  %v234_v3 = vld [vmem:[%s199_s11 + $0x6] sm:$0x3]  ;;  %v236_v4 = vsel %vm235_vm0, %v231_v0, 0.0  ;;  %v237_v5 = vsel %vm235_vm0, %v232_v1, 0.0 }
  0x66   : > { %v238_v6 = vadd.f32 %v237_v5, %v236_v4  ;;  %v239_v7 = vsel %vm235_vm0, %v233_v2, 0.0  ;;  %v241_v8 = vsel %vm235_vm0, %v234_v3, 0.0  ;;  %s957_s22 = sld [smem:[#allocation7]]  ;;  %s959_s25 = sld [smem:[#allocation7 + $0x1]] }
  0x67   : > { %s961_s29 = sld [smem:[#allocation7 + $0x2]]  ;;  %s963_s30 = sld [smem:[#allocation7 + $0x3]] }
  0x68   : > { %v240_v9 = vadd.f32 %v239_v7, %v238_v6  ;;  %s965_s28 = sld [smem:[#allocation8 + $0x1]]  ;;  %s967_s27 = sld [smem:[#allocation7 + $0x80]] }
  0x69   : > { %s969_s20 = sld [smem:[#allocation7 + $0x81]]  ;;  %s971_s4 = sld [smem:[#allocation7 + $0x82]] }
  0x6a   : > { %v242_v10 = vadd.f32 %v241_v8, %v240_v9  ;;  %s973_s18 = sld [smem:[#allocation7 + $0x83]]  ;;  %s975_s19 = sld [smem:[#allocation8 + $0x2]]  ;;  %v267_v29 = vstv %s955_s21 }
  0x6b   : > { %s977_s6 = sld [smem:[#allocation7 + $0x100]]  ;;  %s979_s7 = sld [smem:[#allocation7 + $0x101]] }
  0x6c   : > { %v243_v11 = vmul.f32 0.25, %v242_v10  ;;  %s981_s10 = sld [smem:[#allocation7 + $0x102]]  ;;  %s983_s11 = sld [smem:[#allocation7 + $0x103]]  ;;  %v269_v30 = vstv %s957_s22  ;;  %v273_v31 = vstv %s959_s25 }
  0x6d   : > { %s985_s9 = sld [smem:[#allocation8 + $0x3]]  ;;  %s987_s0 = sld [smem:[#allocation7 + $0x180]]  ;;  %v277_v32 = vstv %s961_s29  ;;  %v281_v33 = vstv %s963_s30 }
  0x6e   : > { %v244_v12 = vsub.f32 %v231_v0, %v243_v11  ;;  %v245_v13 = vsub.f32 %v232_v1, %v243_v11  ;;  %v246_v14 = vsub.f32 %v233_v2, %v243_v11  ;;  %v247_v15 = vsub.f32 %v234_v3, %v243_v11  ;;  %s989_s1 = sld [smem:[#allocation7 + $0x181]]  ;;  %s991_s2 = sld [smem:[#allocation7 + $0x182]] }
  0x6f   : > { %s993_s5 = sld [smem:[#allocation7 + $0x183]]  ;;  %v286_v34 = vstv %s965_s28  ;;  %v288_v35 = vstv %s967_s27  ;;  %v292_v36 = vstv %s969_s20  ;;  %v296_v38 = vstv %s971_s4  ;;  %p1099_p12 = scmp.ne.s32.totalorder %s1087_s23, 0 }
  0x70   : > { %v248_v16 = vmul.f32 %v244_v12, %v244_v12  ;;  %v249_v17 = vmul.f32 %v245_v13, %v245_v13  ;;  %v250_v18 = vmul.f32 %v246_v14, %v246_v14  ;;  %v251_v19 = vmul.f32 %v247_v15, %v247_v15  ;;  %s755_s29 = smov [#allocation9]  }
  0x71   : > { %v300_v39 = vstv %s973_s18  ;;  %v306_v40 = vstv %s975_s19  ;;  %v308_v41 = vstv %s977_s6  ;;  %v312_v45 = vstv %s979_s7  ;;  %s662_s30 = sshll.u32 %s755_s29, 4  ;;  %s663_s30 = int_to_ptr.vmem [resolvable:$false] %s662_s30 }
  0x72   : > { %v252_v20 = vsel %vm235_vm0, %v248_v16, 0.0  ;;  %v253_v21 = vsel %vm235_vm0, %v249_v17, 0.0  ;;  %v255_v22 = vsel %vm235_vm0, %v250_v18, 0.0  ;;  %v257_v24 = vsel %vm235_vm0, %v251_v19, 0.0  ;;  %s664_s28 = scalar_lea.vmem %s663_s30, 256 }
  0x73   : > { %v254_v23 = vadd.f32 %v253_v21, %v252_v20  ;;  %v316_v46 = vstv %s981_s10  ;;  %v320_v47 = vstv %s983_s11  ;;  %v326_v48 = vstv %s985_s9 }
  0x74   : > { %v328_v49 = vstv %s987_s0  ;;  %v332_v53 = vstv %s989_s1  ;;  %v336_v56 = vstv %s991_s2  ;;  %s1098_s0 = sshll.u32 %s929_s8, 3 }
  0x75   : > { %v256_v25 = vadd.f32 %v255_v22, %v254_v23  ;;  %v340_v57 = vstv %s993_s5  ;;  %s230_s1 = scalar_lea.vmem [#allocation9], %s1098_s0  ;;  %s510_s5 = sshll.u32 %s740_s15, 7 }
  0x76   : > { %s360_s2 = sshll.u32 %s230_s1, 4  ;;  %s1023_s22 = scalar_lea.hbm %s1075_s3, %s510_s5  ;;  %s1018_s2 = int_to_ptr.vmem [resolvable:$true] %s360_s2 }
  0x77   : > { %v258_v26 = vadd.f32 %v257_v24, %v256_v25  ;;  %s346_s15 = scalar_lea.sflag [#allocation4], %s929_s8  ;;  %s658_s25 = scalar_lea.vmem %s1018_s2, 128 }
  0x78   : > { %p659_p13 = scmp.ne.s32.totalorder %s1018_s2, %s658_s25  ;;  %p665_p10 = scmp.lt.s32.totalorder %s1018_s2, %s663_s30 }
  0x79   : > { %v259_v27 = vmul.f32 0.25, %v258_v26  ;;  %p666_p11 = scmp.lt.s32.totalorder %s664_s28, %s658_s25 }
  0x7a   : > { %p660_p0 = pnand %p659_p13, %p1099_p12 }
  0x7b   : > { %v260_v28 = vadd.f32 1e-05, %v259_v27  ;;  %p667_p3 = por %p666_p11, %p665_p10 }
  0x7c   : > { %p661_p5 = pneg %p660_p0 }
  0x7d   : > { %598 = vrsqrt.f32 %v260_v28 }
  0x7e   : > { %p668_p7 = pnand %p667_p3, %p661_p5 }
  0x87   : > { %v599_v37 = vpop.eup %598 }
  0x88   : > { %v262_v42 = vmul.f32 %v599_v37, %v244_v12  ;;  %v263_v43 = vmul.f32 %v599_v37, %v245_v13  ;;  %v264_v44 = vmul.f32 %v599_v37, %v246_v14  ;;  %v265_v50 = vmul.f32 %v599_v37, %v247_v15 }
  0x8a   : > { %v270_v51 = vmul.f32 %v269_v30, %v262_v42  ;;  %v274_v52 = vmul.f32 %v273_v31, %v263_v43  ;;  %v289_v54 = vmul.f32 %v288_v35, %v262_v42  ;;  %v293_v55 = vmul.f32 %v292_v36, %v263_v43 }
  0x8b   : > { %v278_v59 = vmul.f32 %v277_v32, %v264_v44  ;;  %v309_v60 = vmul.f32 %v308_v41, %v262_v42  ;;  %v313_v61 = vmul.f32 %v312_v45, %v263_v43  ;;  %v297_v63 = vmul.f32 %v296_v38, %v264_v44 }
  0x8c   : > { %v271_v58 = vadd.f32 %v270_v51, %v267_v29  ;;  %v290_v62 = vadd.f32 %v289_v54, %v286_v34  ;;  %v329_v0 = vmul.f32 %v328_v49, %v262_v42  ;;  %v333_v1 = vmul.f32 %v332_v53, %v263_v43 }
  0x8d   : > { %v282_v3 = vmul.f32 %v281_v33, %v265_v50  ;;  %v310_v4 = vadd.f32 %v309_v60, %v306_v40  ;;  %v317_v5 = vmul.f32 %v316_v46, %v264_v44  ;;  %v301_v7 = vmul.f32 %v300_v39, %v265_v50 }
  0x8e   : > { %v275_v2 = vadd.f32 %v274_v52, %v271_v58  ;;  %v294_v6 = vadd.f32 %v293_v55, %v290_v62  ;;  %v330_v8 = vadd.f32 %v329_v0, %v326_v48  ;;  %v337_v9 = vmul.f32 %v336_v56, %v264_v44 }
  0x8f   : > { %v314_v11 = vadd.f32 %v313_v61, %v310_v4  ;;  %v321_v12 = vmul.f32 %v320_v47, %v265_v50  ;;  %v341_v15 = vmul.f32 %v340_v57, %v265_v50 }
  0x90   : > { %v279_v10 = vadd.f32 %v278_v59, %v275_v2  ;;  %v298_v13 = vadd.f32 %v297_v63, %v294_v6  ;;  %v334_v14 = vadd.f32 %v333_v1, %v330_v8 }
  0x91   : > { %v318_v17 = vadd.f32 %v317_v5, %v314_v11 }
  0x92   : > { %v283_v16 = vadd.f32 %v282_v3, %v279_v10  ;;  %v302_v18 = vadd.f32 %v301_v7, %v298_v13  ;;  %v338_v19 = vadd.f32 %v337_v9, %v334_v14 }
  0x93   : > { %v322_v20 = vadd.f32 %v321_v12, %v318_v17 }
  0x94   : > { %284 = vst [vmem:[%s230_s1] sm:$0x3] %v283_v16  ;;  %491 = vst [vmem:[%s230_s1 + $0x2] sm:$0x3] %v302_v18  ;;  %v342_v21 = vadd.f32 %v341_v15, %v338_v19 }
  0x95   : > { %497 = vst [vmem:[%s230_s1 + $0x4] sm:$0x3] %v322_v20 }
  0x96   : > { %503 = vst [vmem:[%s230_s1 + $0x6] sm:$0x3] %v342_v21 }
  0x97   : > { %671 = shalt.err (!%p668_p7)
}
  0x98   : > { %s672_s27 = scalar_lea.hbm %s1023_s22, 128  ;;  %s676_s18 = scalar_lea.hbm %s1075_s3, 256 }
  0x99   : > { %p673_p9 = scmp.ne.s32.totalorder %s1023_s22, %s672_s27  ;;  %p677_p1 = scmp.lt.u32.totalorder %s1023_s22, %s1075_s3 }
  0x9a   : > { %p678_p8 = scmp.lt.u32.totalorder %s676_s18, %s672_s27  ;;  %p680_p13 = scmp.lt.u32.totalorder %s672_s27, %s1023_s22 }
  0x9b   : > { %p674_p2 = pnand %p673_p9, %p1099_p12 }
  0x9c   : > { %p679_p4 = por %p678_p8, %p677_p1 }
  0x9d   : > { %p675_p6 = pneg %p674_p2 }
  0x9e   : > { %p681_p0 = por %p680_p13, %p679_p4 }
  0xa0   : > { %p682_p5 = pnand %p681_p0, %p675_p6 }
  0xa2   : > { %685 = shalt.err (!%p682_p5)
}
  0xa3   : > { %s756_s7 = smov 32   ;;  %s757_s10 = smov 2  }
  0xa4   : > { %521 = dma.vmem_to_hbm [thread:$0]  (%p1099_p12), %s1018_s2, 128, %s1023_s22, %s346_s15, %s756_s7, %s756_s7, %s757_s10  }
  0xa5 PF: > { %s375_s11 = sand.u32 1, %s728_s12   ;;  %p1100_p10 = scmp.ne.s32.totalorder %s1088_s24, 0 }
  0xa6   : > { %p1101_p11 = scmp.ge.s32.totalorder %s748_s17, 2  ;;  %s376_s0 = scalar_lea.sflag [#allocation4], %s375_s11 }
  0xa8   : > { %p535_p3 = pnand %p1101_p11, %p1100_p10 }
  0xaa   : > { %723 = dma.done.wait (!%p535_p3), %s376_s0, 128  }
  0xab   : > { %725 = vsyncadd (!%p535_p3), %s376_s0, 4294967168  ;;  %s21_s17 = sadd.s32 1, %s748_s17   ;;  %s1102_s23 = sld [smem:[#allocation14_spill]] }
  0xac   : > { %p18_p7 = scmp.ge.s32.totalorder %s21_s17, 4   ;;  %s1103_s12 = smov %s732_s13 }
  0xad   : > { %s1104_s13 = smov %s736_s14  ;;  %s1105_s14 = smov %s894_s26 }
  0xae   : > { %s1106_s15 = smov %s744_s16  ;;  %20 = sbr.rel (!%p18_p7) target bundleno = 12 (0xc), region = 90 }
  0xb1   : > { %s1107_s16 = smov %s1102_s23 }
  0xb5   :  { %381 = vsyncpa [#allocation3], 1 }
  0xb6   :  { %383 = vsyncpa [#allocation3 + $0x1], 1 }
  0xb7   :  { %384 = vsyncpa [#allocation4], 1 }
  0xb8   :  { %386 = vsyncpa [#allocation4 + $0x1], 1 }
  0xb9   :  { %387 = vsyncpa [#allocation5], 1 }
  0xba   :  { %389 = vsyncpa [#allocation5 + $0x1], 1 }
  0xbb   :  { %390 = vsyncpa [#allocation6], 1 }
  0xbc   :  { %392 = vsyncpa [#allocation6 + $0x1], 1 }

</bundles_post_ra>
